<compile_context>
chip_gen: v5e
topology: v5e:2x2
jax: 0.10.0
libtpu: 0.0.40
codegen_flags: <defaults>
</compile_context>

<pallas_src>
import math

import jax
import jax.numpy as jnp
from jax.experimental import pallas as pl
from jax.experimental.pallas import tpu as pltpu


# ---------------------------------------------------------------------------
# Tiling / VMEM budgeting helpers
# ---------------------------------------------------------------------------

# Per-buffer target for the streamed x blocks (the pipeline double-buffers
# them).  ~2 MiB/buffer already sits near the HBM roofline and leaves ample
# VMEM headroom on v7x (64 MiB physical).
_X_BUF_BUDGET_BYTES = 2 * 1024 * 1024


def _round_up(v, m):
    return ((v + m - 1) // m) * m


def _sublane_multiple(dtype):
    # sublane packing of the second-to-last dim: f32 -> 8, bf16 -> 16, int8 -> 32
    return {4: 8, 2: 16, 1: 32}.get(jnp.dtype(dtype).itemsize, 8)


def _pick_tiles(B, S, H, x_dtype, budget_bytes=_X_BUF_BUDGET_BYTES):
    """Pick (tb, ts) using *padded* VMEM block sizes (H->128 lanes, S->sublanes)."""
    itemsize = jnp.dtype(x_dtype).itemsize
    h_pad = _round_up(H, 128)
    s_sub = _sublane_multiple(x_dtype)

    def x_block_bytes(tb, ts):
        return tb * _round_up(ts, s_sub) * h_pad * itemsize

    # Batch tile: >=2 batch grid steps when B > 8 (v7x megacore shards the
    # 'parallel' batch axis); 8-aligned so the (tb, D)/(tb, H) output and
    # accumulator tiles stay sublane-dense.
    tb = B if B <= 8 else min(_round_up(pl.cdiv(B, 2), 8), 64)

    # Prefer whole-S chunks (the lane-dense (tb, S) mask block is then
    # trivially legal); shrink the batch tile toward 8 first.
    while B > 8 and tb > 8 and x_block_bytes(tb, S) > budget_bytes:
        tb -= 8

    if x_block_bytes(tb, S) <= budget_bytes or S <= 128:
        return tb, S

    # Still too big: chunk S in multiples of 128 so the lane-dense (tb, ts)
    # mask block keeps a legal (lane-divisible) last dim.
    ts = max(128, (budget_bytes // (tb * h_pad * itemsize)) // 128 * 128)
    return tb, min(ts, S)


def _vmem_limit_bytes():
    """Generation-aware scoped-VMEM limit: ~1/3 of physical, floored at 16 MiB."""
    cap = 64 * 1024 * 1024  # conservative default = v7x physical VMEM per TC
    try:
        info = pltpu.get_tpu_info()
        cap = int(getattr(info, "vmem_capacity_bytes", cap)) or cap
    except Exception:
        pass
    return int(min(max(cap // 3, 16 * 1024 * 1024), cap // 2))


# ---------------------------------------------------------------------------
# Kernel
# ---------------------------------------------------------------------------

def _make_matgen_mean_kernel(S, ts):
    """Kernel factory; S and ts are trace-time constants (ragged-chunk guard)."""
    ragged = (S % ts) != 0

    def kernel(x_ref, mask_ref, w_ref, b_ref, o_ref, acc_ref, msum_ref):
        # x_ref:    (TB, TS, H)  native dtype (f32 or bf16), one S chunk
        # mask_ref: (TB, TS)     lane-dense mask chunk
        # w_ref:    (H, D)       transposed torch weight (resident)
        # b_ref:    (1, D)       bias (resident)
        # o_ref:    (TB, D)      output batch tile
        # acc_ref:  (TB, H) f32  running masked sum        (scratch)
        # msum_ref: (TB, 1) f32  running mask count        (scratch)
        j = pl.program_id(1)

        @pl.when(j == 0)
        def _():
            acc_ref[...] = jnp.zeros_like(acc_ref)
            msum_ref[...] = jnp.zeros_like(msum_ref)

        x = x_ref[...].astype(jnp.float32)        # small chunk -> bounded f32 temp
        m = mask_ref[...].astype(jnp.float32)

        if ragged:
            # The last S chunk extends past the array boundary; the VMEM
            # contents there are undefined, so zero them before accumulating.
            col = jax.lax.broadcasted_iota(jnp.int32, m.shape, 1)
            valid = (j * ts + col) < S
            m = jnp.where(valid, m, 0.0)
            x = jnp.where(valid[:, :, None], x, 0.0)

        acc_ref[...] += jnp.sum(x * m[:, :, None], axis=1)          # (TB, H)
        msum_ref[...] += jnp.sum(m, axis=1, keepdims=True)          # (TB, 1)

        @pl.when(j == pl.num_programs(1) - 1)
        def _():
            # Project first, then scale by 1/mask_sum (identical math to
            # dividing the pooled features; far fewer divides: TB*D vs TB*H).
            proj = jnp.dot(acc_ref[...], w_ref[...],
                           preferred_element_type=jnp.float32)      # (TB, D)
            # eps guard keeps padded/garbage tail batch rows finite; real rows
            # have mask_sum >= 1 so it is a no-op for them.
            inv = 1.0 / jnp.maximum(msum_ref[...], 1e-9)
            o_ref[...] = (proj * inv + b_ref[...]).astype(o_ref.dtype)

    return kernel


# ---------------------------------------------------------------------------
# Wrapper
# ---------------------------------------------------------------------------

def mat_generator_mean(x, mask, w_t, b, *, batch_tile=None, s_tile=None):
    """MATGenerator forward (aggregation_type='mean', n_layers=1).

    x: (B, S, H) float, mask: (B, S), w_t: (H, D) = torch weight.T, b: (D,).
    """
    B, S, H = x.shape
    D = w_t.shape[1]

    w_t = w_t.astype(jnp.float32)
    b2 = b.reshape(1, D).astype(jnp.float32)

    tb, ts = _pick_tiles(B, S, H, x.dtype)
    if batch_tile is not None:
        tb = min(int(batch_tile), B)
    if s_tile is not None:
        ts = min(int(s_tile), S)
    if ts != S:
        # Lane-dense (tb, ts) mask block needs a 128-divisible lane extent.
        assert ts % 128 == 0, "S tile must be a multiple of 128 or equal S"

    grid = (pl.cdiv(B, tb), pl.cdiv(S, ts))

    flops = 2 * B * S * H + 2 * B * H * D + 3 * B * D
    bytes_accessed = (B * S * H * x.dtype.itemsize
                      + B * S * mask.dtype.itemsize
                      + H * D * 4 + D * 4
                      + B * D * x.dtype.itemsize)

    kernel = _make_matgen_mean_kernel(S, ts)

    return pl.pallas_call(
        kernel,
        out_shape=jax.ShapeDtypeStruct((B, D), x.dtype),
        grid_spec=pltpu.PrefetchScalarGridSpec(
            num_scalar_prefetch=0,
            grid=grid,
            in_specs=[
                pl.BlockSpec((tb, ts, H), lambda i, j: (i, j, 0)),  # x: streamed
                pl.BlockSpec((tb, ts), lambda i, j: (i, j)),        # mask: lane-dense
                pl.BlockSpec((H, D), lambda i, j: (0, 0)),          # W: resident
                pl.BlockSpec((1, D), lambda i, j: (0, 0)),          # b: resident
            ],
            out_specs=pl.BlockSpec((tb, D), lambda i, j: (i, 0)),
            scratch_shapes=[
                pltpu.VMEM((tb, H), jnp.float32),   # running masked sum
                pltpu.VMEM((tb, 1), jnp.float32),   # running mask count
            ],
        ),
        compiler_params=pltpu.CompilerParams(
            dimension_semantics=("parallel", "arbitrary"),
            vmem_limit_bytes=_vmem_limit_bytes(),
        ),
        cost_estimate=pl.CostEstimate(
            flops=flops, transcendentals=0, bytes_accessed=bytes_accessed),
    )(x, mask, w_t, b2)


# ---------------------------------------------------------------------------
# Self-test
# ---------------------------------------------------------------------------

if __name__ == "__main__":
    key = jax.random.PRNGKey(0)
    kx, km, kw, kb, k2x, k2m = jax.random.split(key, 6)

    # Module-consistent small shapes: batch, seq(atoms), hsize, d_output.
    B, S, H, D = 2, 8, 32, 4

    x = jax.random.normal(kx, (B, S, H), dtype=jnp.float32)
    # Padding mask: 1.0 for valid atoms, 0.0 for padded; at least one valid
    # atom per molecule (mask_sum > 0), as in the real model.
    valid_lens = jnp.array([6, 5], dtype=jnp.int32)
    mask = (jnp.arange(S)[None, :] < valid_lens[:, None]).astype(jnp.float32)

    # nn.Linear(hsize, d_output) deterministic init (U(-1/sqrt(fan_in), ...)).
    bound = 1.0 / math.sqrt(H)
    w = jax.random.uniform(kw, (D, H), minval=-bound, maxval=bound,
                           dtype=jnp.float32)          # torch layout (out, in)
    b = jax.random.uniform(kb, (D,), minval=-bound, maxval=bound,
                           dtype=jnp.float32)
    w_t = w.T                                          # (H, D) for the kernel

    def ref_fn(xx, mm):
        m3 = mm[..., None]
        pooled = (xx * m3).sum(axis=1) / m3.sum(axis=1)
        return pooled @ w_t + b

    # --- Test 1: tiny shapes (single grid step per axis) -------------------
    out = jax.block_until_ready(mat_generator_mean(x, mask, w_t, b))
    ref = ref_fn(x, mask)
    assert out.shape == (B, D)
    assert jnp.allclose(out, ref, atol=1e-5, rtol=1e-5)

    # --- Test 2: exercise the multi-step accumulator path (2 batch tiles,
    #     2 S chunks with a ragged final chunk: 160 = 128 + 32) -------------
    B2, S2 = 16, 160
    x2 = jax.random.normal(k2x, (B2, S2, H), dtype=jnp.float32)
    lens2 = jax.random.randint(k2m, (B2,), 1, S2 + 1)
    mask2 = (jnp.arange(S2)[None, :] < lens2[:, None]).astype(jnp.float32)

    out2 = jax.block_until_ready(
        mat_generator_mean(x2, mask2, w_t, b, batch_tile=8, s_tile=128))
    ref2 = ref_fn(x2, mask2)
    assert out2.shape == (B2, D)
    assert jnp.allclose(out2, ref2, atol=1e-4, rtol=1e-4)

    print("KERNEL_OK")
</pallas_src>

<mosaic_0001>
module attributes {stable_mosaic.version = 11 : i64} {
  func.func @kernel(%arg0: i32, %arg1: i32, %arg2: memref<2x8x32xf32, #tpu.memory_space<vmem>>, %arg3: memref<2x8xf32, #tpu.memory_space<vmem>>, %arg4: memref<32x4xf32, #tpu.memory_space<vmem>>, %arg5: memref<1x4xf32, #tpu.memory_space<vmem>>, %arg6: memref<2x4xf32, #tpu.memory_space<vmem>>, %arg7: memref<2x32xf32, #tpu.memory_space<vmem>>, %arg8: memref<2x1xf32, #tpu.memory_space<vmem>>) attributes {dimension_semantics = [#tpu.dimension_semantics<parallel>, #tpu.dimension_semantics<arbitrary>], iteration_bounds = array<i64: 1, 1>, scalar_prefetch = 0 : i64, scratch_operands = 2 : i64, tpu.core_type = #tpu.core_type<tc>, window_params = [{transform_indices = @transform_0, window_bounds = array<i64: 2, 8, 32>}, {transform_indices = @transform_1, window_bounds = array<i64: 2, 8>}, {pipeline_mode = #tpu.pipeline_mode<synchronous>, transform_indices = @transform_2, window_bounds = array<i64: 32, 4>}, {pipeline_mode = #tpu.pipeline_mode<synchronous>, transform_indices = @transform_3, window_bounds = array<i64: 1, 4>}, {transform_indices = @transform_4, window_bounds = array<i64: 2, 4>}]} {
    %c0_i32 = arith.constant 0 : i32
    %0 = arith.cmpi eq, %arg1, %c0_i32 : i32
    %1 = arith.extui %0 : i1 to i32
    %c0_i32_0 = arith.constant 0 : i32
    %2 = arith.cmpi ne, %1, %c0_i32_0 : i32
    scf.if %2 {
      %cst_16 = arith.constant 0.000000e+00 : f32
      %20 = vector.broadcast %cst_16 : f32 to vector<2x32xf32>
      %c0_17 = arith.constant 0 : index
      %c0_18 = arith.constant 0 : index
      %21 = vector.load %arg7[%c0_17, %c0_18] : memref<2x32xf32, #tpu.memory_space<vmem>>, vector<2x32xf32>
      tpu.vector_store %arg7[%c0_17, %c0_18], %20 {strides = array<i32>} : memref<2x32xf32, #tpu.memory_space<vmem>>, vector<2x32xf32>,
      %cst_19 = arith.constant 0.000000e+00 : f32
      %22 = vector.broadcast %cst_19 : f32 to vector<2x1xf32>
      %c0_20 = arith.constant 0 : index
      %c0_21 = arith.constant 0 : index
      %23 = vector.load %arg8[%c0_20, %c0_21] : memref<2x1xf32, #tpu.memory_space<vmem>>, vector<2x1xf32>
      tpu.vector_store %arg8[%c0_20, %c0_21], %22 {strides = array<i32>} : memref<2x1xf32, #tpu.memory_space<vmem>>, vector<2x1xf32>,
    } else {
    }
    %c0 = arith.constant 0 : index
    %c0_1 = arith.constant 0 : index
    %c0_2 = arith.constant 0 : index
    %3 = vector.load %arg2[%c0, %c0_1, %c0_2] : memref<2x8x32xf32, #tpu.memory_space<vmem>>, vector<2x8x32xf32>
    %c0_3 = arith.constant 0 : index
    %c0_4 = arith.constant 0 : index
    %4 = vector.load %arg3[%c0_3, %c0_4] : memref<2x8xf32, #tpu.memory_space<vmem>>, vector<2x8xf32>
    %c0_5 = arith.constant 0 : index
    %c0_6 = arith.constant 0 : index
    %5 = vector.load %arg7[%c0_5, %c0_6] : memref<2x32xf32, #tpu.memory_space<vmem>>, vector<2x32xf32>
    %6 = vector.shape_cast %4 : vector<2x8xf32> to vector<2x8x1xf32>
    %7 = vector.broadcast %6 : vector<2x8x1xf32> to vector<2x8x32xf32>
    %8 = arith.mulf %3, %7 : vector<2x8x32xf32>
    %cst = arith.constant dense<0.000000e+00> : vector<2x32xf32>
    %9 = vector.multi_reduction <add>, %8, %cst [1] : vector<2x8x32xf32> to vector<2x32xf32>
    %10 = arith.addf %5, %9 : vector<2x32xf32>
    %c0_7 = arith.constant 0 : index
    %c0_8 = arith.constant 0 : index
    %11 = vector.load %arg7[%c0_7, %c0_8] : memref<2x32xf32, #tpu.memory_space<vmem>>, vector<2x32xf32>
    tpu.vector_store %arg7[%c0_7, %c0_8], %10 {strides = array<i32>} : memref<2x32xf32, #tpu.memory_space<vmem>>, vector<2x32xf32>,
    %c0_9 = arith.constant 0 : index
    %c0_10 = arith.constant 0 : index
    %12 = vector.load %arg8[%c0_9, %c0_10] : memref<2x1xf32, #tpu.memory_space<vmem>>, vector<2x1xf32>
    %cst_11 = arith.constant dense<0.000000e+00> : vector<2xf32>
    %13 = vector.multi_reduction <add>, %4, %cst_11 [1] : vector<2x8xf32> to vector<2xf32>
    %14 = vector.shape_cast %13 : vector<2xf32> to vector<2x1xf32>
    %15 = arith.addf %12, %14 : vector<2x1xf32>
    %c0_12 = arith.constant 0 : index
    %c0_13 = arith.constant 0 : index
    %16 = vector.load %arg8[%c0_12, %c0_13] : memref<2x1xf32, #tpu.memory_space<vmem>>, vector<2x1xf32>
    tpu.vector_store %arg8[%c0_12, %c0_13], %15 {strides = array<i32>} : memref<2x1xf32, #tpu.memory_space<vmem>>, vector<2x1xf32>,
    %c0_i32_14 = arith.constant 0 : i32
    %17 = arith.cmpi eq, %arg1, %c0_i32_14 : i32
    %18 = arith.extui %17 : i1 to i32
    %c0_i32_15 = arith.constant 0 : i32
    %19 = arith.cmpi ne, %18, %c0_i32_15 : i32
    scf.if %19 {
      %c0_16 = arith.constant 0 : index
      %c0_17 = arith.constant 0 : index
      %20 = vector.load %arg7[%c0_16, %c0_17] : memref<2x32xf32, #tpu.memory_space<vmem>>, vector<2x32xf32>
      %c0_18 = arith.constant 0 : index
      %c0_19 = arith.constant 0 : index
      %21 = vector.load %arg4[%c0_18, %c0_19] : memref<32x4xf32, #tpu.memory_space<vmem>>, vector<32x4xf32>
      %cst_20 = arith.constant dense<0.000000e+00> : vector<2x4xf32>
      %22 = tpu.matmul %20, %21, %cst_20 {dimension_numbers = #tpu.dot_dimension_numbers<[1], [0], [0], [1], [0, 0, 1, 1], [], []>} : vector<2x32xf32>, vector<32x4xf32>, vector<2x4xf32> -> vector<2x4xf32>
      %c0_21 = arith.constant 0 : index
      %c0_22 = arith.constant 0 : index
      %23 = vector.load %arg8[%c0_21, %c0_22] : memref<2x1xf32, #tpu.memory_space<vmem>>, vector<2x1xf32>
      %cst_23 = arith.constant 9.99999971E-10 : f32
      %24 = vector.broadcast %cst_23 : f32 to vector<2x1xf32>
      %25 = arith.maximumf %23, %24 : vector<2x1xf32>
      %cst_24 = arith.constant 1.000000e+00 : f32
      %26 = vector.broadcast %cst_24 : f32 to vector<2x1xf32>
      %27 = arith.divf %26, %25 : vector<2x1xf32>
      %28 = vector.broadcast %27 : vector<2x1xf32> to vector<2x4xf32>
      %29 = arith.mulf %22, %28 : vector<2x4xf32>
      %c0_25 = arith.constant 0 : index
      %c0_26 = arith.constant 0 : index
      %30 = vector.load %arg5[%c0_25, %c0_26] : memref<1x4xf32, #tpu.memory_space<vmem>>, vector<1x4xf32>
      %31 = vector.broadcast %30 : vector<1x4xf32> to vector<2x4xf32>
      %32 = arith.addf %29, %31 : vector<2x4xf32>
      %c0_27 = arith.constant 0 : index
      %c0_28 = arith.constant 0 : index
      %33 = vector.load %arg6[%c0_27, %c0_28] : memref<2x4xf32, #tpu.memory_space<vmem>>, vector<2x4xf32>
      tpu.vector_store %arg6[%c0_27, %c0_28], %32 {strides = array<i32>} : memref<2x4xf32, #tpu.memory_space<vmem>>, vector<2x4xf32>,
    } else {
    }
    return
  }
  func.func @transform_0(%arg0: i32, %arg1: i32) -> (i32, i32, i32) {
    %c0_i32 = arith.constant 0 : i32
    %c0_i32_0 = arith.constant 0 : i32
    return %arg0, %arg1, %c0_i32 : i32, i32, i32
  }
  func.func @transform_1(%arg0: i32, %arg1: i32) -> (i32, i32) {
    %c0_i32 = arith.constant 0 : i32
    return %arg0, %arg1 : i32, i32
  }
  func.func @transform_2(%arg0: i32, %arg1: i32) -> (i32, i32) {
    %c0_i32 = arith.constant 0 : i32
    %c0_i32_0 = arith.constant 0 : i32
    %c0_i32_1 = arith.constant 0 : i32
    return %c0_i32, %c0_i32_0 : i32, i32
  }
  func.func @transform_3(%arg0: i32, %arg1: i32) -> (i32, i32) {
    %c0_i32 = arith.constant 0 : i32
    %c0_i32_0 = arith.constant 0 : i32
    %c0_i32_1 = arith.constant 0 : i32
    return %c0_i32, %c0_i32_0 : i32, i32
  }
  func.func @transform_4(%arg0: i32, %arg1: i32) -> (i32, i32) {
    %c0_i32 = arith.constant 0 : i32
    %c0_i32_0 = arith.constant 0 : i32
    return %arg0, %c0_i32 : i32, i32
  }
}

</mosaic_0001>

<bundles_post_ra>
// kernel: tpu_custom_call.1
= control target key start
LH: loop header
LB: loop body
LE: loop exit
PB: predicated region body
PF: predicated region fallthrough
CT: control target
= control target key end

     0   :  { %v31_v0 = vlaneseq  ;;  %vm70_vm0 = vcmask 58368   ;;  %s252_s0 = inlined_call_operand.vmem [shape: f32[2,8,32], index: 0, kind: input, shape index: {}]   ;;  %s253_s1 = inlined_call_operand.vmem [shape: f32[2,8], index: 1, kind: input, shape index: {}]   ;;  %s254_s2 = inlined_call_operand.vmem [shape: f32[32,4], index: 2, kind: input, shape index: {}]   ;;  %s255_s3 = inlined_call_operand.vmem [shape: f32[1,4], index: 3, kind: input, shape index: {}]   ;;  %s256_s4 = inlined_call_operand.hbm [shape: f32[2,4], index: 4, kind: output, shape index: {}]  }
   0x1   :  { %v28_v1 = vld [vmem:[%s253_s1] sm:$0x3] }
   0x2   :  { %v71_v2 = vsel %vm70_vm0, %v28_v1, 0.0 }
   0x3   :  { %9 = vsyncpa [#allocation5], 0  ;;  %v32_v3 = vshrl.u32 %v31_v0, 7  ;;  %72 = vadd.xlane.f32.xlu1 %v71_v2  ;;  %v30_v4 = vperm.slane %v28_v1, 0  ;;  %v37_v5 = vperm.slane %v28_v1, 1  ;;  %vm24_vm1 = vcmask 1024  }
   0x4   :  { %v190_v6 = vmov 0.0   ;;  %vm22_vm2 = vcmask 254976   ;;  %v84_v7 = vld [vmem:[%s254_s2 + $0x18] sm:$0xff]  ;;  %v83_v8 = vld [vmem:[%s254_s2 + $0x10] sm:$0xff]  ;;  %v191_v9 = vmov 0   ;;  %v82_v10 = vld [vmem:[%s254_s2 + $0x8] sm:$0xff] }
   0x5   :  { %158 = vset.pattern.permute.xlu0 %v32_v3  ;;  %25 = vst.msk [vmem:[#allocation3] sm:$0x3] %vm24_vm1, %v190_v6  ;;  %100 = vmatpush.msra.mxu0 %v84_v7  ;;  %v81_v12 = vld [vmem:[%s254_s2] sm:$0xff]  ;;  %vm46_vm3 = vcmask 261120   ;;  %v27_v22 = vld [vmem:[%s252_s0 + $0x8] sm:$0xff]  ;;  %vm63_vm8 = vcmask 1041409  }
   0x6   :  { %23 = vst.msk [vmem:[#allocation2] sm:$0x3] %vm22_vm2, %v190_v6  ;;  %159 = vset.pattern.permute.xlu1 %v191_v9  ;;  %v26_v15 = vld [vmem:[%s252_s0] sm:$0xff]  ;;  %s192_s28 = smov [#allocation4]   ;;  %s145_s6 = sshll.u32 %s256_s4, 4  ;;  %vm136_vm9 = vcmask 25600   ;;  %s146_s6 = int_to_ptr.hbm [resolvable:$true] %s145_s6 }
   0x7   :  { %101 = vmatpush.msra.mxu0 %v83_v8  ;;  %v161_v51 = vld [vmem:[%s255_s3] ss:$0 sm:$0xff]  ;;  %s143_s29 = sshll.u32 %s192_s28, 4  ;;  %s144_s29 = int_to_ptr.vmem [resolvable:$true] %s143_s29 }
   0x9   :  { %102 = vmatpush.msra.mxu0 %v82_v10 }
   0xb   :  { %103 = vmatpush.msra.mxu0 %v81_v12 }
   0xc   :  { %v69_v11 = vld [vmem:[#allocation3] sm:$0x3] }
   0xd   :  { %35 = vperm.xlu0 %158, %v30_v4   ;;  %v29_v45 = vld [vmem:[#allocation2] sm:$0x3] }
  0x15   :  { %42 = vperm.xlu0 %158, %v37_v5  }
  0x1d   :  { %160 = vset.pattern.permute.xlu0 %v191_v9 }
  0x76   :  { %v73_v13 = vpop.xlane.xlu1 %72 }
  0x77   :  { %v74_v14 = vadd.f32 %v73_v13, %v69_v11 }
  0x79   :  { %76 = vst.msk [vmem:[#allocation3] sm:$0x3] %vm24_vm1, %v74_v14 }
  0x7f   :  { %v36_v16 = vpop.permute.xlu0 %35 }
  0x80   :  { %v44_v17 = vmul.f32 %v36_v16, %v26_v15  ;;  %v108_v18 = vld [vmem:[#allocation3] sm:$0x3] }
  0x81   :  { %v109_v19 = vmax.f32 %v108_v18, 1e-09 }
  0x82   :  { %v47_v20 = vsel %vm46_vm3, %v44_v17, 0.0 }
  0x83   :  { %162 = vrcp.f32 %v109_v19  ;;  %v48_v21 = vrot.slane %v47_v20, 4  ;;  %v121_v30 = vand.u32 2147483648, %v109_v19  ;;  %vm115_vm4 = vweird.f32 %v109_v19 }
  0x84   :  { %v119_v33 = vand.u32 2147483647, %v109_v19 }
  0x85   :  { %v49_v23 = vadd.f32 %v48_v21, %v47_v20  ;;  %v122_v37 = vor.u32 1.1754944e-38, %v121_v30 }
  0x86   :  { %vm120_vm7 = vcmp.eq.f32.partialorder %v119_v33, 8.507059e+37 }
  0x87   :  { %v43_v24 = vpop.permute.xlu0 %42  ;;  %v50_v27 = vrot.slane %v49_v23, 2 }
  0x88   :  { %v45_v25 = vmul.f32 %v43_v24, %v27_v22 }
  0x89   :  { %v163_v26 = vpop.eup %162  ;;  %v51_v34 = vadd.f32 %v50_v27, %v49_v23 }
  0x8a   :  { %v111_v28 = vmul.f32 %v163_v26, %v109_v19  ;;  %v54_v29 = vsel %vm46_vm3, %v45_v25, 0.0  ;;  %vm116_vm5 = vweird.f32 %v163_v26 }
  0x8b   :  { %v55_v31 = vrot.slane %v54_v29, 4  ;;  %vm117_vm6 = vmor %vm115_vm4, %vm116_vm5  ;;  %v52_v40 = vrot.slane %v51_v34, 1 }
  0x8c   :  { %v112_v32 = vsub.f32 1.0, %v111_v28 }
  0x8d   :  { %v56_v35 = vadd.f32 %v55_v31, %v54_v29  ;;  %v53_v46 = vadd.f32 %v52_v40, %v51_v34 }
  0x8e   :  { %v113_v36 = vmul.f32 %v163_v26, %v112_v32 }
  0x8f   :  { %v57_v38 = vrot.slane %v56_v35, 2 }
  0x90   :  { %v114_v39 = vadd.f32 %v163_v26, %v113_v36 }
  0x91   :  { %v58_v41 = vadd.f32 %v57_v38, %v56_v35 }
  0x92   :  { %v118_v42 = vsel %vm117_vm6, %v163_v26, %v114_v39 }
  0x93   :  { %v123_v43 = vsel %vm120_vm7, %v122_v37, %v118_v42  ;;  %v59_v44 = vrot.slane %v58_v41, 1 }
  0x94   :  { %127 = vperm.xlu1 %159, %v123_v43  }
  0x95   :  { %v60_v47 = vadd.f32 %v59_v44, %v58_v41 }
  0x97   :  { %v64_v48 = vsel %vm63_vm8, %v60_v47, %v53_v46 }
  0x98   :  { %v66_v49 = vadd.f32 %v64_v48, %v29_v45 }
  0x9a   :  { %68 = vst.msk [vmem:[#allocation2] sm:$0x3] %vm22_vm2, %v66_v49 }
  0xa1   :  { %v80_v50 = vld [vmem:[#allocation2] sm:$0x3] }
  0xa2   :  { %154 = vmatmul.msk.f32.vlgmr.msra.gmra.mxu0 %vm46_vm3, %v80_v50 }
 0x106   :  { %v128_v52 = vpop.permute.xlu1 %127 }
 0x11f   :  { %v105_v53 = vpop.f32.mrf.mxu0 }
 0x120   :  { %v130_v54 = vmul.f32 %v128_v52, %v105_v53 }
 0x122   :  { %v135_v55 = vadd.f32 %v161_v51, %v130_v54 }
 0x124   :  { %137 = vst.msk [vmem:[#allocation4] sm:$0x3] %vm136_vm9, %v135_v55 }
 0x125   :  { %148 = dma.vmem_to_hbm [thread:$0]  %s144_s29, 32, %s146_s6, [#allocation5]  }
 0x126   :  { %188 = dma.done.wait [#allocation5], 32  }
 0x127   :  { %189 = vsyncadd [#allocation5], 4294967264 }
 0x128   :  { %153 = vsyncpa [#allocation5], 1 }

</bundles_post_ra>
